<compile_context>
chip_gen: v7x
topology: tpu7x:2x2x1
jax: 0.10.0
libtpu: 0.0.40
codegen_flags: <defaults>
</compile_context>

<pallas_src>
import functools
import math

import jax
import jax.numpy as jnp
from jax.experimental import pallas as pl
from jax.experimental.pallas import tpu as pltpu


def _mish_kernel(x_ref, o_ref):
    x = x_ref[...].astype(jnp.float32)
    u = jnp.exp(-jnp.abs(x))          # single transcendental on the EUP
    u2 = u * u
    pos = x >= 0.0
    num = jnp.where(pos, 1.0 + 2.0 * u, 2.0 * u + u2)
    den = jnp.where(pos, 1.0 + 2.0 * u + 2.0 * u2, 2.0 + 2.0 * u + u2)
    # EUP approximate reciprocal + one Newton-Raphson step (~f32 accuracy),
    # cheap VPU FMAs instead of a second/third transcendental.
    r = pl.reciprocal(den, approx=True)
    r = r * (2.0 - den * r)
    o_ref[...] = (x * num * r).astype(o_ref.dtype)


@functools.lru_cache(maxsize=None)
def _device_tuning():
    """(block_bytes, vmem_limit_bytes) derived from the local TPU generation."""
    block_bytes = 4 << 20      # fallback: fits every scoped-VMEM default
    vmem_limit = 32 << 20
    try:
        vmem_cap = int(pltpu.get_tpu_info().vmem_capacity_bytes)
        # ~8 MiB blocks everywhere (v7x: 64 MiB VMEM -> vmem_cap // 8);
        # 2 in-bufs + 2 out-bufs = 4x block must sit under the scoped limit.
        block_bytes = max(2 << 20, min(8 << 20, vmem_cap // 8))
        vmem_limit = min(5 * block_bytes, (vmem_cap * 5) // 8)
    except Exception:  # interpret mode / API drift: keep conservative defaults
        pass
    return block_bytes, vmem_limit


def _choose_cols(n: int):
    """Largest lane-dense width (multiple of 128) that divides n, else None."""
    for cols in (2048, 1024, 512, 256, 128):
        if n % cols == 0:
            return cols
    return None


def _mish_2d(x2d: jax.Array, *, block_bytes: int, vmem_limit_bytes: int) -> jax.Array:
    rows, cols = x2d.shape
    itemsize = jnp.dtype(x2d.dtype).itemsize
    # Dtype-native sublane multiple: 8 (f32), 16 (bf16/f16), 32 (int8/fp8).
    align = max(8, 32 // itemsize)

    block_rows = max(1, block_bytes // (cols * itemsize))
    if block_rows >= rows:
        block_rows = rows                                   # full extent: legal
    else:
        block_rows = max(align, (block_rows // align) * align)
        block_rows = min(block_rows, rows)

    # Never collapse to grid=(1,) when the array is splittable: give the
    # "parallel" axis >= 2 steps so megacore (v7x, 2 TCs) can shard it.
    if block_rows == rows and rows > align:
        block_rows = ((rows - 1) // align) * align

    grid = (pl.cdiv(rows, block_rows),)                     # partial last block is masked

    return pl.pallas_call(
        _mish_kernel,
        out_shape=jax.ShapeDtypeStruct((rows, cols), x2d.dtype),
        grid_spec=pltpu.PrefetchScalarGridSpec(
            num_scalar_prefetch=0,
            grid=grid,
            in_specs=[pl.BlockSpec((block_rows, cols), lambda i: (i, 0))],
            out_specs=pl.BlockSpec((block_rows, cols), lambda i: (i, 0)),
        ),
        compiler_params=pltpu.CompilerParams(
            dimension_semantics=("parallel",),
            vmem_limit_bytes=vmem_limit_bytes,
        ),
    )(x2d)


def _mish_ref(x):
    xf = x.astype(jnp.float32)
    sp = jnp.maximum(xf, 0.0) + jnp.log1p(jnp.exp(-jnp.abs(xf)))
    return (xf * jnp.tanh(sp)).astype(x.dtype)


def mish(x: jax.Array, *, block_bytes: int | None = None) -> jax.Array:
    """Elementwise Mish (x * tanh(softplus(x))). Accepts any shape/dtype."""
    orig_shape = x.shape
    n = math.prod(orig_shape) if orig_shape else 1
    if n == 0:
        return x
    flat = x.reshape(-1)

    dev_block, vmem_limit = _device_tuning()
    if block_bytes is None:
        block_bytes = dev_block

    cols = _choose_cols(n)
    if cols is not None:
        # Common case: pure reshape (no data movement), one HBM read+write total.
        out2d = _mish_2d(flat.reshape(n // cols, cols),
                         block_bytes=block_bytes, vmem_limit_bytes=vmem_limit)
        return out2d.reshape(orig_shape)

    # Ragged fallback (rare): kernel on the 128-aligned prefix (zero-copy
    # reshape), plain jnp on the <128-element tail.  Avoids the old full-array
    # zero-pad + scatter + slice passes.
    n_main = (n // 128) * 128
    pieces = []
    if n_main:
        main = _mish_2d(flat[:n_main].reshape(n_main // 128, 128),
                        block_bytes=block_bytes, vmem_limit_bytes=vmem_limit)
        pieces.append(main.reshape(-1))
    if n_main < n:
        pieces.append(_mish_ref(flat[n_main:]))
    out = pieces[0] if len(pieces) == 1 else jnp.concatenate(pieces)
    return out.reshape(orig_shape)


def _check(x, atol=1e-5, rtol=1e-4, **kw):
    y = jax.block_until_ready(mish(x, **kw))
    y_ref = _mish_ref(x)
    assert y.shape == x.shape and y.dtype == x.dtype
    err = float(jnp.max(jnp.abs(y.astype(jnp.float32) - y_ref.astype(jnp.float32))))
    assert jnp.allclose(y.astype(jnp.float32), y_ref.astype(jnp.float32),
                        atol=atol, rtol=rtol), err


if __name__ == "__main__":
    key = jax.random.PRNGKey(0)

    # NCHW, consistent with the PyTorch conv layout used in CSPdarknet.
    x = jax.random.normal(key, (2, 4, 16, 16), dtype=jnp.float32) * 3.0
    _check(x)

    # Multi-block path with a masked partial last block (rows=15, cols=512).
    k2 = jax.random.PRNGKey(1)
    x2 = jax.random.normal(k2, (1, 3, 20, 128), dtype=jnp.float32) * 3.0
    _check(x2)

    # bf16 path (dtype-aware sublane alignment).
    k4 = jax.random.PRNGKey(3)
    x4 = (jax.random.normal(k4, (2, 8, 16, 16), dtype=jnp.float32) * 3.0).astype(jnp.bfloat16)
    _check(x4, atol=3e-2, rtol=3e-2)

    # Ragged element count -> prefix + jnp-tail fallback path.
    k3 = jax.random.PRNGKey(2)
    x3 = jax.random.normal(k3, (5, 7), dtype=jnp.float32) * 3.0
    _check(x3)

    print("KERNEL_OK")
</pallas_src>

<mosaic_0001>
module attributes {stable_mosaic.version = 11 : i64} {
  func.func @_mish_kernel(%arg0: i32, %arg1: memref<1x2048xf32, #tpu.memory_space<vmem>>, %arg2: memref<1x2048xf32, #tpu.memory_space<vmem>>) attributes {dimension_semantics = [#tpu.dimension_semantics<parallel>], iteration_bounds = array<i64: 1>, scalar_prefetch = 0 : i64, scratch_operands = 0 : i64, tpu.core_type = #tpu.core_type<tc>, window_params = [{transform_indices = @transform_0, window_bounds = array<i64: 1, 2048>}, {transform_indices = @transform_1, window_bounds = array<i64: 1, 2048>}]} {
    %c0 = arith.constant 0 : index
    %c0_0 = arith.constant 0 : index
    %0 = vector.load %arg1[%c0, %c0_0] : memref<1x2048xf32, #tpu.memory_space<vmem>>, vector<1x2048xf32>
    %1 = math.absf %0 : vector<1x2048xf32>
    %cst = arith.constant 0.000000e+00 : f32
    %2 = vector.broadcast %cst : f32 to vector<1x2048xf32>
    %3 = arith.subf %2, %1 : vector<1x2048xf32>
    %4 = math.exp %3 : vector<1x2048xf32>
    %5 = arith.mulf %4, %4 : vector<1x2048xf32>
    %cst_1 = arith.constant 0.000000e+00 : f32
    %6 = vector.broadcast %cst_1 : f32 to vector<1x2048xf32>
    %7 = arith.cmpf oge, %0, %6 : vector<1x2048xf32>
    %cst_2 = arith.constant 2.000000e+00 : f32
    %8 = vector.broadcast %cst_2 : f32 to vector<1x2048xf32>
    %9 = arith.mulf %8, %4 : vector<1x2048xf32>
    %cst_3 = arith.constant 1.000000e+00 : f32
    %10 = vector.broadcast %cst_3 : f32 to vector<1x2048xf32>
    %11 = arith.addf %10, %9 : vector<1x2048xf32>
    %cst_4 = arith.constant 2.000000e+00 : f32
    %12 = vector.broadcast %cst_4 : f32 to vector<1x2048xf32>
    %13 = arith.mulf %12, %4 : vector<1x2048xf32>
    %14 = arith.addf %13, %5 : vector<1x2048xf32>
    %15 = arith.select %7, %11, %14 : vector<1x2048xi1>, vector<1x2048xf32>
    %cst_5 = arith.constant 2.000000e+00 : f32
    %16 = vector.broadcast %cst_5 : f32 to vector<1x2048xf32>
    %17 = arith.mulf %16, %4 : vector<1x2048xf32>
    %cst_6 = arith.constant 1.000000e+00 : f32
    %18 = vector.broadcast %cst_6 : f32 to vector<1x2048xf32>
    %19 = arith.addf %18, %17 : vector<1x2048xf32>
    %cst_7 = arith.constant 2.000000e+00 : f32
    %20 = vector.broadcast %cst_7 : f32 to vector<1x2048xf32>
    %21 = arith.mulf %20, %5 : vector<1x2048xf32>
    %22 = arith.addf %19, %21 : vector<1x2048xf32>
    %cst_8 = arith.constant 2.000000e+00 : f32
    %23 = vector.broadcast %cst_8 : f32 to vector<1x2048xf32>
    %24 = arith.mulf %23, %4 : vector<1x2048xf32>
    %cst_9 = arith.constant 2.000000e+00 : f32
    %25 = vector.broadcast %cst_9 : f32 to vector<1x2048xf32>
    %26 = arith.addf %25, %24 : vector<1x2048xf32>
    %27 = arith.addf %26, %5 : vector<1x2048xf32>
    %28 = arith.select %7, %22, %27 : vector<1x2048xi1>, vector<1x2048xf32>
    %29 = tpu.reciprocal %28 {approx = true} : vector<1x2048xf32> -> vector<1x2048xf32>
    %30 = arith.mulf %28, %29 : vector<1x2048xf32>
    %cst_10 = arith.constant 2.000000e+00 : f32
    %31 = vector.broadcast %cst_10 : f32 to vector<1x2048xf32>
    %32 = arith.subf %31, %30 : vector<1x2048xf32>
    %33 = arith.mulf %29, %32 : vector<1x2048xf32>
    %34 = arith.mulf %0, %15 : vector<1x2048xf32>
    %35 = arith.mulf %34, %33 : vector<1x2048xf32>
    %c0_11 = arith.constant 0 : index
    %c0_12 = arith.constant 0 : index
    %36 = vector.load %arg2[%c0_11, %c0_12] : memref<1x2048xf32, #tpu.memory_space<vmem>>, vector<1x2048xf32>
    tpu.vector_store %arg2[%c0_11, %c0_12], %35 {strides = array<i32>} : memref<1x2048xf32, #tpu.memory_space<vmem>>, vector<1x2048xf32>,
    return
  }
  func.func @transform_0(%arg0: i32) -> (i32, i32) {
    %c0_i32 = arith.constant 0 : i32
    %c0_i32_0 = arith.constant 0 : i32
    return %arg0, %c0_i32 : i32, i32
  }
  func.func @transform_1(%arg0: i32) -> (i32, i32) {
    %c0_i32 = arith.constant 0 : i32
    %c0_i32_0 = arith.constant 0 : i32
    return %arg0, %c0_i32 : i32, i32
  }
}

</mosaic_0001>

<bundles_post_ra>
// kernel: tpu_custom_call.1
= control target key start
LH: loop header
LB: loop body
LE: loop exit
PB: predicated region body
PF: predicated region fallthrough
CT: control target
= control target key end

     0   :  { %6 = vsyncpa [#allocation3], 0  ;;  %s178_s0 = inlined_call_operand.hbm [shape: f32[1,2048], index: 0, kind: input, shape index: {}]   ;;  %s179_s1 = inlined_call_operand.hbm [shape: f32[1,2048], index: 1, kind: output, shape index: {}]  }
   0x1   :  { %7 = vsyncpa [#allocation4], 0  ;;  %s140_s6 = smov [#allocation2]   ;;  %s92_s10 = scalar_lea.hbm %s178_s0, 256 }
   0x2   :  { %s14_s7 = sshll.u32 %s140_s6, 4  ;;  %p93_p0 = scmp.ne.s32.totalorder %s178_s0, %s92_s10  ;;  %s15_s7 = int_to_ptr.vmem [resolvable:$true] %s14_s7 }
   0x3   :  { %p96_p1 = scmp.lt.u32.totalorder %s92_s10, %s178_s0 }
   0x5   :  { %p98_p2 = pnand %p96_p1, %p93_p0 }
   0x7   :  { %101 = shalt.err (!%p98_p2)
}
   0x8   :  { %s102_s15 = scalar_lea.vmem %s15_s7, 256  ;;  %p107_p4 = scmp.lt.s32.totalorder %s15_s7, %s15_s7 }
   0x9   :  { %p103_p3 = scmp.ne.s32.totalorder %s15_s7, %s102_s15  ;;  %p108_p5 = scmp.lt.s32.totalorder %s102_s15, %s102_s15 }
   0xb   :  { %p109_p6 = por %p108_p5, %p107_p4 }
   0xd   :  { %p110_p7 = pnand %p109_p6, %p103_p3 }
   0xf   :  { %113 = shalt.err (!%p110_p7)
}
  0x10   :  { %17 = dma.hbm_to_vmem [thread:$0]  %s178_s0, 256, %s15_s7, [#allocation3]  }
  0x11   :  { %136 = dma.done.wait [#allocation3], 256  }
  0x12   :  { %137 = vsyncadd [#allocation3], 4294967040  ;;  %v21_v0 = vld [vmem:[#allocation2] sm:$0xff]  ;;  %v22_v1 = vld [vmem:[#allocation2 + $0x8] sm:$0xff]  ;;  %s141_s0 = smov [#allocation5]  }
  0x13   :  { %v23_v2 = vand.u32 2147483647, %v21_v0  ;;  %v24_v3 = vand.u32 2147483647, %v22_v1  ;;  %vm33_vm0 = vcmp.ge.f32.partialorder %v21_v0, 0.0  ;;  %vm34_vm1 = vcmp.ge.f32.partialorder %v22_v1, 0.0 }
  0x14   :  { %s73_s18 = sshll.u32 %s141_s0, 4  ;;  %s74_s18 = int_to_ptr.vmem [resolvable:$true] %s73_s18 }
  0x15   :  { %v25_v4 = vsub.f32 0.0, %v23_v2  ;;  %v26_v5 = vsub.f32 0.0, %v24_v3  ;;  %s114_s19 = scalar_lea.vmem %s74_s18, 256  ;;  %p119_p9 = scmp.lt.s32.totalorder %s74_s18, %s74_s18 }
  0x16   :  { %p115_p8 = scmp.ne.s32.totalorder %s74_s18, %s114_s19  ;;  %p120_p10 = scmp.lt.s32.totalorder %s114_s19, %s114_s19 }
  0x17   :  { %v27_v6 = vmul.f32 1.442695, %v25_v4  ;;  %v29_v7 = vmul.f32 1.442695, %v26_v5 }
  0x18   :  { %p121_p11 = por %p120_p10, %p119_p9 }
  0x19   :  { %84 = vpow2.f32 %v27_v6 }
  0x1a   :  { %86 = vpow2.f32 %v29_v7  ;;  %p122_p12 = pnand %p121_p11, %p115_p8 }
  0x23   :  { %v85_v8 = vpop.eup %84 }
  0x24   :  { %v87_v9 = vpop.eup %86  ;;  %v31_v10 = vmul.f32 %v85_v8, %v85_v8  ;;  %v35_v11 = vmul.f32 2.0, %v85_v8 }
  0x25   :  { %v32_v12 = vmul.f32 %v87_v9, %v87_v9  ;;  %v36_v13 = vmul.f32 2.0, %v87_v9 }
  0x26   :  { %v37_v14 = vadd.f32 1.0, %v35_v11  ;;  %v43_v15 = vmul.f32 2.0, %v31_v10  ;;  %v47_v16 = vadd.f32 2.0, %v35_v11  ;;  %v39_v26 = vadd.f32 %v35_v11, %v31_v10 }
  0x27   :  { %v38_v17 = vadd.f32 1.0, %v36_v13  ;;  %v44_v18 = vmul.f32 2.0, %v32_v12  ;;  %v48_v19 = vadd.f32 2.0, %v36_v13  ;;  %v40_v27 = vadd.f32 %v36_v13, %v32_v12 }
  0x28   :  { %v45_v20 = vadd.f32 %v43_v15, %v37_v14  ;;  %v49_v21 = vadd.f32 %v47_v16, %v31_v10  ;;  %v41_v29 = vsel %vm33_vm0, %v37_v14, %v39_v26 }
  0x29   :  { %v46_v22 = vadd.f32 %v44_v18, %v38_v17  ;;  %v50_v23 = vadd.f32 %v48_v19, %v32_v12  ;;  %v42_v32 = vsel %vm34_vm1, %v38_v17, %v40_v27  ;;  %v61_v35 = vmul.f32 %v41_v29, %v21_v0 }
  0x2a   :  { %v51_v24 = vsel %vm33_vm0, %v45_v20, %v49_v21  ;;  %v62_v37 = vmul.f32 %v42_v32, %v22_v1 }
  0x2b   :  { %88 = vrcp.f32 %v51_v24  ;;  %v52_v25 = vsel %vm34_vm1, %v46_v22, %v50_v23 }
  0x2c   :  { %90 = vrcp.f32 %v52_v25 }
  0x35   :  { %v89_v28 = vpop.eup %88 }
  0x36   :  { %v91_v30 = vpop.eup %90  ;;  %v55_v31 = vmul.f32 %v89_v28, %v51_v24 }
  0x37   :  { %v56_v33 = vmul.f32 %v91_v30, %v52_v25 }
  0x38   :  { %v57_v34 = vsub.f32 2.0, %v55_v31 }
  0x39   :  { %v58_v36 = vsub.f32 2.0, %v56_v33 }
  0x3a   :  { %v59_v38 = vmul.f32 %v89_v28, %v57_v34 }
  0x3b   :  { %v60_v39 = vmul.f32 %v91_v30, %v58_v36 }
  0x3c   :  { %v63_v40 = vmul.f32 %v61_v35, %v59_v38 }
  0x3d   :  { %v64_v41 = vmul.f32 %v62_v37, %v60_v39 }
  0x3e   :  { %65 = vst [vmem:[#allocation5] sm:$0xff] %v63_v40 }
  0x3f   :  { %66 = vst [vmem:[#allocation5 + $0x8] sm:$0xff] %v64_v41 }
  0x40   :  { %125 = shalt.err (!%p122_p12)
}
  0x41   :  { %s126_s22 = scalar_lea.hbm %s179_s1, 256 }
  0x42   :  { %p127_p13 = scmp.ne.s32.totalorder %s179_s1, %s126_s22  ;;  %p130_p0 = scmp.lt.u32.totalorder %s126_s22, %s179_s1 }
  0x44   :  { %p132_p1 = pnand %p130_p0, %p127_p13 }
  0x46   :  { %135 = shalt.err (!%p132_p1)
}
  0x47   :  { %76 = dma.vmem_to_hbm [thread:$0]  %s74_s18, 256, %s179_s1, [#allocation4]  }
  0x48   :  { %138 = dma.done.wait [#allocation4], 256  }
  0x49   :  { %139 = vsyncadd [#allocation4], 4294967040 }
  0x4a   :  { %80 = vsyncpa [#allocation3], 1 }
  0x4b   :  { %81 = vsyncpa [#allocation4], 1 }

</bundles_post_ra>
